<compile_context>
chip_gen: v5e
topology: v5e:2x2
jax: 0.10.0
libtpu: 0.0.40
codegen_flags: <defaults>
</compile_context>

<pallas_src>
import jax
import jax.numpy as jnp
from jax.experimental import pallas as pl
from jax.experimental.pallas import tpu as pltpu


kelvin_table = {
    1000: (255, 56, 0), 1500: (255, 109, 0), 2000: (255, 137, 18),
    2500: (255, 161, 72), 3000: (255, 180, 107), 3500: (255, 196, 137),
    4000: (255, 209, 163), 4500: (255, 219, 186), 5000: (255, 228, 206),
    5500: (255, 236, 224), 6000: (255, 243, 239), 6500: (255, 249, 253),
    7000: (245, 243, 255), 7500: (235, 238, 255), 8000: (227, 233, 255),
    8500: (220, 229, 255), 9000: (214, 225, 255), 9500: (208, 222, 255),
    10000: (204, 219, 255),
}


def _adjust_temp_kernel(x_ref, s_ref, o_ref):
    # x_ref/o_ref: (rb, cb) VMEM tile; s_ref: (rb, 1) f32 per-row scale.
    # Compute in f32 (matches the PyTorch reference math), cast on store.
    x = x_ref[...].astype(jnp.float32)
    o_ref[...] = (x * s_ref[...]).astype(o_ref.dtype)


def _largest_lane_divisor(n_cols, max_width):
    """Largest multiple of 128 that divides n_cols and is <= max_width (0 if none)."""
    if n_cols % 128 != 0:
        return 0
    n = n_cols // 128
    best = 0
    k = 1
    while k * k <= n:
        if n % k == 0:
            for d in (k, n // k):
                w = d * 128
                if w <= max_width and w > best:
                    best = w
        k += 1
    return best


def _pick_col_block(n_cols, max_width):
    """Lane-dense col block: multiple of 128, ideally dividing n_cols."""
    max_width = max(128, (max_width // 128) * 128)
    w = _largest_lane_divisor(n_cols, max_width)
    if w:
        return w
    # No exact divisor: accept a ragged last block (still lane-dense body).
    return min(max_width, max(128, (n_cols // 128) * 128))


def _pick_blocks(n_rows, n_cols, itemsize):
    """Choose (row_block, col_block) for the flattened (N*C, H*W) slab.

    Targets ~4 MiB tiles / <= 16 MiB double-buffered in+out pipeline (safe on
    v5e/v6e/v7x), prefers full-extent columns (contiguous DMA, unmasked vst),
    rounds rows to the dtype's sublane packing, and never leaves a (1,1) grid
    when the slab can be split.
    """
    sub = max(8, 32 // itemsize)        # 8 f32, 16 bf16/fp16, 32 int8/fp8
    budget = 16 << 20                   # double-buffered in+out pipeline bytes
    per_tile_cap = budget // 4          # bytes per tile (2 in bufs + 2 out bufs)
    min_blocks = 4                      # keep the pipeline fed / core-splittable

    def round_rows(r):
        if r >= n_rows:
            return n_rows
        r = max(sub, (r // sub) * sub)
        return n_rows if r >= n_rows else r

    if n_cols * itemsize * sub <= per_tile_cap:
        # Full-extent columns fit the tile budget: fully contiguous per-tile DMA.
        cb = n_cols
        rb = round_rows(per_tile_cap // (n_cols * itemsize))
        if rb >= n_rows:
            # Whole slab fits one tile -> still split so grid steps pipeline.
            if n_rows >= 2 * sub:
                per_blk = -(-n_rows // min_blocks)          # ceil
                rb = -(-per_blk // sub) * sub               # round up to sublane
            elif n_cols >= 2 * 128:
                cb = _pick_col_block(n_cols, -(-n_cols // min_blocks))
                rb = n_rows
            # else: genuinely tiny input, (1,1) is fine.
    else:
        # Columns must be split: lane-dense width near the tile target.
        cb = _pick_col_block(n_cols, per_tile_cap // (sub * itemsize))
        rb = round_rows(per_tile_cap // (cb * itemsize))
    return rb, cb


def _dimension_semantics(grid):
    """CORE_PARALLEL only on v7x (2 TCs) and only on an axis with >= 2 blocks."""
    kind = ""
    try:
        kind = jax.devices()[0].device_kind.lower()
    except Exception:
        pass
    if "v7" in kind:
        if grid[0] >= 2:
            return (pltpu.CORE_PARALLEL, pltpu.ARBITRARY)
        if grid[1] >= 2:
            return (pltpu.ARBITRARY, pltpu.CORE_PARALLEL)
    return ("parallel", "parallel")


def adjust_temp_pallas(imgs, scale):
    """imgs: (N, C, H, W); scale: (C,) per-channel factor.  Always applies."""
    N, C, H, W = imgs.shape
    R, L = N * C, H * W
    itemsize = jnp.dtype(imgs.dtype).itemsize

    x2 = imgs.reshape(R, L)                                   # free reshape (NCHW row-major)
    # Per-row scale in f32: row (n, c) -> scale[c].
    row_scale = jnp.tile(scale.astype(jnp.float32), N).reshape(R, 1)

    rb, cb = _pick_blocks(R, L, itemsize)
    grid = (pl.cdiv(R, rb), pl.cdiv(L, cb))

    out2 = pl.pallas_call(
        _adjust_temp_kernel,
        out_shape=jax.ShapeDtypeStruct((R, L), imgs.dtype),
        grid=grid,
        in_specs=[
            pl.BlockSpec((rb, cb), lambda i, j: (i, j)),      # image slab tile
            pl.BlockSpec((rb, 1), lambda i, j: (i, 0)),       # per-row scale
        ],
        out_specs=pl.BlockSpec((rb, cb), lambda i, j: (i, j)),
        compiler_params=pltpu.CompilerParams(
            dimension_semantics=_dimension_semantics(grid),
            vmem_limit_bytes=32 << 20,
        ),
        cost_estimate=pl.CostEstimate(
            flops=R * L,
            transcendentals=0,
            bytes_accessed=2 * R * L * itemsize,
        ),
    )(x2, row_scale)
    return out2.reshape(N, C, H, W)


@jax.jit
def _gated_adjust_temp(imgs, cm, apply):
    # Skip the kernel (and the full HBM read+write) when the aug is gated off.
    # TODO(synk): donate imgs (donate_argnums) + input_output_aliases for true
    # in-place update when the caller no longer needs the input buffer.
    return jax.lax.cond(
        apply,
        lambda x: adjust_temp_pallas(x, cm),
        lambda x: x,
        imgs,
    )


class RandomAdjustTemp:
    """JAX/Pallas port of the PyTorch RandomAdjustTemp module (NCHW, C==3)."""

    def __init__(self, color=5500, p=0.5):
        self.p = p
        self.color = [color] if isinstance(color, int) else list(color)
        if not all(c in kelvin_table for c in self.color):
            print("Not all color temperatures are valid.")
        # (0, 0, 0) for invalid temps matches the PyTorch reference behavior.
        self._table = jnp.array(
            [kelvin_table.get(c, (0, 0, 0)) for c in self.color],
            dtype=jnp.float32) / 255.0

    def __call__(self, imgs, key):
        if imgs.ndim != 4 or imgs.shape[1] != 3:
            raise ValueError(
                f"RandomAdjustTemp expects NCHW RGB images (C==3), got {imgs.shape}")
        k_gate, k_pick = jax.random.split(key)
        # PyTorch: `if torch.rand(1) > p: return imgs`  => apply w.p. p
        apply = jax.random.uniform(k_gate, ()) <= self.p
        idx = jax.random.randint(k_pick, (), 0, len(self.color))
        cm = self._table[idx]
        return _gated_adjust_temp(imgs, cm, apply)


if __name__ == "__main__":
    key = jax.random.PRNGKey(0)
    k_img, k_aug = jax.random.split(key)

    N, C, H, W = 2, 3, 16, 16  # C=3: RGB images, as the kelvin table implies
    imgs = jax.random.uniform(k_img, (N, C, H, W), dtype=jnp.float32)

    aug = RandomAdjustTemp(color=[5000, 5500, 6000], p=0.5)
    out = jax.block_until_ready(aug(imgs, k_aug))

    # Reference with the same random draws.
    k_gate, k_pick = jax.random.split(k_aug)
    apply = jax.random.uniform(k_gate, ()) <= 0.5
    idx = jax.random.randint(k_pick, (), 0, 3)
    table = jnp.array(
        [kelvin_table[c] for c in [5000, 5500, 6000]], dtype=jnp.float32) / 255.0
    scale = jnp.where(apply, table[idx], jnp.ones((3,), jnp.float32))
    ref = imgs * scale[None, :, None, None]
    assert jnp.allclose(out, ref, atol=1e-6, rtol=1e-6), "mismatch vs reference"

    # Exercise the Pallas kernel path unconditionally (the cond may gate it off).
    direct = jax.block_until_ready(adjust_temp_pallas(imgs, table[0]))
    ref_direct = imgs * table[0][None, :, None, None]
    assert jnp.allclose(direct, ref_direct, atol=1e-6, rtol=1e-6), \
        "mismatch vs reference (direct kernel path)"

    # Exercise a larger, realistic aug shape (small batch, 224x224) so the
    # multi-block tiling path (full-extent cols, >=2 grid steps) also runs.
    imgs_big = jax.random.uniform(k_img, (8, 3, 224, 224), dtype=jnp.float32)
    out_big = jax.block_until_ready(adjust_temp_pallas(imgs_big, table[1]))
    ref_big = imgs_big * table[1][None, :, None, None]
    assert jnp.allclose(out_big, ref_big, atol=1e-6, rtol=1e-6), \
        "mismatch vs reference (large-shape kernel path)"

    print("KERNEL_OK")
</pallas_src>

<mosaic_0001>
module attributes {stable_mosaic.version = 11 : i64} {
  func.func @_adjust_temp_kernel(%arg0: i32, %arg1: i32, %arg2: memref<6x128xf32, #tpu.memory_space<vmem>>, %arg3: memref<6x1xf32, #tpu.memory_space<vmem>>, %arg4: memref<6x128xf32, #tpu.memory_space<vmem>>) attributes {dimension_semantics = [#tpu.dimension_semantics<parallel>, #tpu.dimension_semantics<parallel>], iteration_bounds = array<i64: 1, 2>, scalar_prefetch = 0 : i64, scratch_operands = 0 : i64, tpu.core_type = #tpu.core_type<tc>, window_params = [{transform_indices = @transform_0, window_bounds = array<i64: 6, 128>}, {transform_indices = @transform_1, window_bounds = array<i64: 6, 1>}, {transform_indices = @transform_2, window_bounds = array<i64: 6, 128>}]} {
    %c0 = arith.constant 0 : index
    %c0_0 = arith.constant 0 : index
    %0 = vector.load %arg2[%c0, %c0_0] : memref<6x128xf32, #tpu.memory_space<vmem>>, vector<6x128xf32>
    %c0_1 = arith.constant 0 : index
    %c0_2 = arith.constant 0 : index
    %1 = vector.load %arg3[%c0_1, %c0_2] : memref<6x1xf32, #tpu.memory_space<vmem>>, vector<6x1xf32>
    %2 = vector.broadcast %1 : vector<6x1xf32> to vector<6x128xf32>
    %3 = arith.mulf %0, %2 : vector<6x128xf32>
    %c0_3 = arith.constant 0 : index
    %c0_4 = arith.constant 0 : index
    %4 = vector.load %arg4[%c0_3, %c0_4] : memref<6x128xf32, #tpu.memory_space<vmem>>, vector<6x128xf32>
    tpu.vector_store %arg4[%c0_3, %c0_4], %3 {strides = array<i32>} : memref<6x128xf32, #tpu.memory_space<vmem>>, vector<6x128xf32>,
    return
  }
  func.func @transform_0(%arg0: i32, %arg1: i32) -> (i32, i32) {
    %c0_i32 = arith.constant 0 : i32
    return %arg0, %arg1 : i32, i32
  }
  func.func @transform_1(%arg0: i32, %arg1: i32) -> (i32, i32) {
    %c0_i32 = arith.constant 0 : i32
    %c0_i32_0 = arith.constant 0 : i32
    return %arg0, %c0_i32 : i32, i32
  }
  func.func @transform_2(%arg0: i32, %arg1: i32) -> (i32, i32) {
    %c0_i32 = arith.constant 0 : i32
    return %arg0, %arg1 : i32, i32
  }
}

</mosaic_0001>

<bundles_post_ra>
// kernel: tile.0
= control target key start
LH: loop header
LB: loop body
LE: loop exit
PB: predicated region body
PF: predicated region fallthrough
CT: control target
= control target key end

     0   :  { %s26_s8 = smov 126   ;;  %vm7_vm0 = vcmask 7168   ;;  %s49_s0 = inlined_call_operand.vmem [shape: f32[2,3], index: 0, kind: input, shape index: {}]   ;;  %s50_s1 = inlined_call_operand.vmem [shape: f32[6,1], index: 1, kind: output, shape index: {}]  }
   0x1   :  { %v4_v0 = vld [vmem:[%s49_s0] sm:$0x3]  ;;  %s25_s0 = smov 127  }
   0x2   :  { %5 = vst [vmem:[#allocation0] sm:$0x3] %v4_v0 }
   0x9   :  { %v9_v1 = vld [vmem:[#allocation0] sm:$0x3]  }
   0xa   :  { %10 = vrot.lane.b32.xlu0 %v9_v1, %s25_s0  ;;  %v15_v2 = vld [vmem:[#allocation0] sm:$0x3]  }
   0xb   :  { %v6_v3 = vld [vmem:[#allocation0] sm:$0x3]  }
   0xc   :  { %8 = vst.msk [vmem:[%s50_s1] ss:$3 sm:$0x3] %vm7_vm0, %v6_v3  }
  0x12   :  { %16 = vrot.lane.b32.xlu0 %v15_v2, %s26_s8 }
  0x7c   :  { %v11_v4 = vpop.permute.xlu0 %10  }
  0x7d   :  { %21 = vst.msk [vmem:[%s50_s1 + $0x1] ss:$3 sm:$0x3] %vm7_vm0, %v11_v4  }
  0x84   :  { %v17_v5 = vpop.permute.xlu0 %16  }
  0x85   :  { %22 = vst.msk [vmem:[%s50_s1 + $0x2] ss:$3 sm:$0x3] %vm7_vm0, %v17_v5  }

// kernel: tile.8
= control target key start
LH: loop header
LB: loop body
LE: loop exit
PB: predicated region body
PF: predicated region fallthrough
CT: control target
= control target key end

     0   :  { %s22_s0 = inlined_call_operand.vmem [shape: f32[3], index: 0, kind: input, shape index: {}]   ;;  %s23_s1 = inlined_call_operand.vmem [shape: f32[2,3], index: 1, kind: output, shape index: {}]  }
   0x1   :  { %v4_v0 = vld [vmem:[%s22_s0] ss:$0 sm:$0xff] }
   0x2   :  { %5 = vst [vmem:[%s23_s1] sm:$0x3] %v4_v0 }

// kernel: branch_1_fun.1
= control target key start
LH: loop header
LB: loop body
LE: loop exit
PB: predicated region body
PF: predicated region fallthrough
CT: control target
= control target key end

     0   :  { %s376_s9 = smov 0   ;;  %s378_s10 = smov 0   ;;  %s400_s0 = inlined_call_operand.vmem [shape: f32[6,256], index: 0, kind: input, shape index: {}]   ;;  %s401_s1 = inlined_call_operand.vmem [shape: f32[6,1], index: 1, kind: input, shape index: {}]   ;;  %s402_s2 = inlined_call_operand.vmem [shape: f32[6,256], index: 2, kind: output, shape index: {}]  }
   0x1   :  { %s380_s11 = smov 0  }
   0x2 LB: > { %s21_s12 = sadd.s32 1, %s354_s10  ;;  %p305_p0 = scmp.ge.s32.totalorder %s358_s11, 1  ;;  %s358_s11 = sphi %s380_s11, %s12_s11   ;;  %s354_s10 = sphi %s378_s10, %s404_s10   ;;  %s350_s9 = sphi %s376_s9, %s403_s9  }
   0x3   : > { %p22_p1 = scmp.ge.s32.totalorder %s21_s12, 2  ;;  %p140_p2 = scmp.lt.s32.totalorder %s358_s11, 3 }
   0x5   : > { %s406_s12 = smov (%p22_p1, %s21_s12), 0  ;;  %p141_p3 = pnand %p305_p0, %p140_p2 }
   0x6   : > { %p174_p4 = scmp.lt.s32.totalorder (!%p141_p3), %s350_s9, 1 }
   0x7   : > { %144 = sbr.rel (%p141_p3) target bundleno = 132 (0x84), region = 28 }
   0xc   : > { %v193_v0 = vld [vmem:[%s401_s1] sm:$0x3f]  ;;  %v360_v1 = vmov 0   ;;  %s408_s9 = smov (!%p174_p4, %s350_s9), 1 }
   0xd   : > { %335 = vset.pattern.permute.xlu0 %v360_v1  ;;  %s306_s15 = sshll.u32 %s408_s9, 3 }
   0xe   : > { %196 = vperm.xlu0 %335, %v193_v0   ;;  %s179_s18 = scalar_lea.vmem %s400_s0, %s306_s15  ;;  %s191_s21 = scalar_lea.vmem %s402_s2, %s306_s15 }
   0xf   : > { %v192_v2 = vld [vmem:[%s179_s18] sm:$0x3f] }
  0x80   : > { %v197_v3 = vpop.permute.xlu0 %196 }
  0x81   : > { %v199_v4 = vmul.f32 %v197_v3, %v192_v2 }
  0x83   : > { %200 = vst [vmem:[%s191_s21] sm:$0x3f] %v199_v4 }
  0x84 PF: > { %s12_s11 = sadd.s32 1, %s358_s11   ;;  %s403_s9 = smov %s354_s10 }
  0x85   : > { %p9_p5 = scmp.ge.s32.totalorder %s12_s11, 4   ;;  %s404_s10 = smov %s406_s12 }
  0x87   :  { %11 = sbr.rel (!%p9_p5) target bundleno = 2 (0x2), region = 61 }

</bundles_post_ra>
